<compile_context>
chip_gen: v6e
topology: v6e:2x2x1
jax: 0.10.0
libtpu: 0.0.40
codegen_flags: <defaults>
</compile_context>

<pallas_src>
import functools
import math

import jax
import jax.numpy as jnp
from jax.experimental import pallas as pl
from jax.experimental.pallas import tpu as pltpu


def _gcn_kernel(inp_ref,
                w1_ref, w2_ref, w3_ref, w4_ref,
                g1_ref, be1_ref, g2_ref, be2_ref,
                g3_ref, be3_ref, g4_ref, be4_ref,
                fcw_ref, fcb_ref,
                out_ref,
                *, n_nodes: int, ifsigmoid: bool):
    inp = inp_ref[...]                                   # (B, N, N+F) f32
    # Split adjacency / features inside the kernel (static lane slice).
    adj = inp[:, :, :n_nodes].astype(jnp.bfloat16)       # (B, N, N) bf16
    x = inp[:, :, n_nodes:]                              # (B, N, F) f32

    def gc_bn_relu(x, w_ref, g_ref, be_ref, *, last_row_only=False):
        b, n, f = x.shape
        h = w_ref.shape[1]
        # Feature matmul flattened to a single (B*N, F) @ (F, H) MXU op.
        support = jnp.dot(x.reshape(b * n, f), w_ref[...],
                          preferred_element_type=jnp.float32)
        support = support.reshape(b, n, h).astype(jnp.bfloat16)
        # Adjacency bmm in bf16 with f32 accumulation.
        out = jnp.einsum('bnm,bmh->bnh', adj, support,
                         preferred_element_type=jnp.float32)       # (B,N,H) f32
        # Training-mode BatchNorm1d (biased variance, eps=1e-5) folded into a
        # per-channel scale/shift; one reduction pass (sum & sum-of-squares).
        # NOTE: GraphConvolution's bias is cancelled exactly by the mean
        # subtraction of the BatchNorm that immediately follows, so it is
        # omitted from the kernel (forward output is identical).
        mean = jnp.mean(out, axis=(0, 1), keepdims=True)           # (1,1,H)
        meansq = jnp.mean(out * out, axis=(0, 1), keepdims=True)   # (1,1,H)
        var = jnp.maximum(meansq - mean * mean, 0.0)
        scale = g_ref[...][None, :, :] * jax.lax.rsqrt(var + 1e-5)  # (1,1,H)
        shift = be_ref[...][None, :, :] - mean * scale
        if last_row_only:
            o = out[:, -1, :]                                       # (B, H)
            return jnp.maximum(o * scale[0] + shift[0], 0.0)
        return jnp.maximum(out * scale + shift, 0.0)                # ReLU

    x = gc_bn_relu(x, w1_ref, g1_ref, be1_ref)
    x = gc_bn_relu(x, w2_ref, g2_ref, be2_ref)
    x = gc_bn_relu(x, w3_ref, g3_ref, be3_ref)
    # Layer 4: BN stats from the full output, but normalize/ReLU only the last
    # node row since embeddings = x[:, N-1, :] is all that is consumed.
    emb = gc_bn_relu(x, w4_ref, g4_ref, be4_ref, last_row_only=True)  # (B, H)

    # fc: (B, H) -> (B, 1) as a VPU lane reduction (a 1-wide matmul wastes MXU
    # columns and produces a masked 1-lane store).
    y = jnp.sum(emb * fcw_ref[...], axis=-1, keepdims=True) + fcb_ref[...]
    if ifsigmoid:
        y = jax.nn.sigmoid(y)
    out_ref[...] = y.astype(out_ref.dtype)


def gcn_regressor_forward(inp, params, *, ifsigmoid=True):
    """inp: (B, N, N + nfeat) float32. Returns (B, 1) float32."""
    B, N, _tot = inp.shape
    H = params['w1'].shape[1]

    operands = (
        inp,
        params['w1'], params['w2'], params['w3'], params['w4'],
        params['g1'], params['be1'], params['g2'], params['be2'],
        params['g3'], params['be3'], params['g4'], params['be4'],
        params['fcw'].reshape(1, H), params['fcb'],
    )

    vmem = pl.BlockSpec(memory_space=pltpu.MemorySpace.VMEM)
    kernel = functools.partial(_gcn_kernel, n_nodes=N, ifsigmoid=ifsigmoid)

    # Scoped-VMEM budget sized from the actual footprint (inputs + in-kernel
    # bf16 adj copy + a few (B, N, H) activation temporaries), capped at the
    # smallest physical VMEM across generations (v7x: 64 MiB).
    op_bytes = sum(int(a.size) * 4 for a in operands) + B * 4
    act_bytes = B * N * (2 * N + 16 * H)
    vmem_limit = int(min(64 * 1024 * 1024,
                         max(8 * 1024 * 1024, 2 * (op_bytes + act_bytes))))

    return pl.pallas_call(
        kernel,
        out_shape=jax.ShapeDtypeStruct((B, 1), jnp.float32),
        in_specs=[vmem] * len(operands),
        out_specs=vmem,
        compiler_params=pltpu.CompilerParams(vmem_limit_bytes=vmem_limit),
    )(*operands)


def init_params(key, nfeat, hidden=64):
    ks = jax.random.split(key, 16)
    stdv = 1.0 / math.sqrt(hidden)
    fc_bound = 1.0 / math.sqrt(hidden)
    return {
        # GraphConvolution weights: re-inited to U(-0.05, 0.05) by init_weights()
        'w1': jax.random.uniform(ks[0], (nfeat, hidden), jnp.float32, -0.05, 0.05),
        'w2': jax.random.uniform(ks[1], (hidden, hidden), jnp.float32, -0.05, 0.05),
        'w3': jax.random.uniform(ks[2], (hidden, hidden), jnp.float32, -0.05, 0.05),
        'w4': jax.random.uniform(ks[3], (hidden, hidden), jnp.float32, -0.05, 0.05),
        # GraphConvolution biases (kept for the reference; cancelled by BN)
        'b1': jax.random.uniform(ks[4], (1, hidden), jnp.float32, -stdv, stdv),
        'b2': jax.random.uniform(ks[5], (1, hidden), jnp.float32, -stdv, stdv),
        'b3': jax.random.uniform(ks[6], (1, hidden), jnp.float32, -stdv, stdv),
        'b4': jax.random.uniform(ks[7], (1, hidden), jnp.float32, -stdv, stdv),
        # BatchNorm1d affine params: weight=1, bias=0 (PyTorch default)
        'g1': jnp.ones((1, hidden), jnp.float32), 'be1': jnp.zeros((1, hidden), jnp.float32),
        'g2': jnp.ones((1, hidden), jnp.float32), 'be2': jnp.zeros((1, hidden), jnp.float32),
        'g3': jnp.ones((1, hidden), jnp.float32), 'be3': jnp.zeros((1, hidden), jnp.float32),
        'g4': jnp.ones((1, hidden), jnp.float32), 'be4': jnp.zeros((1, hidden), jnp.float32),
        # fc: nn.Linear(hidden, 1), U(-1/sqrt(hidden), 1/sqrt(hidden))
        'fcw': jax.random.uniform(ks[8], (hidden, 1), jnp.float32, -fc_bound, fc_bound),
        'fcb': jax.random.uniform(ks[9], (1, 1), jnp.float32, -fc_bound, fc_bound),
    }


def _reference_forward(inp, params, *, ifsigmoid=True, bmm_dtype=jnp.float32):
    """Pure-JAX mirror of the PyTorch forward (training-mode BN).
    bmm_dtype=bfloat16 reproduces the kernel's mixed-precision adjacency bmm
    for a tight numerics-matched check."""
    B, N, _ = inp.shape
    adj, x = inp[:, :, :N], inp[:, :, N:]
    adj_c = adj.astype(bmm_dtype)

    def layer(x, w, b, g, be):
        support = jnp.einsum('bnf,fh->bnh', x, w).astype(bmm_dtype)
        out = jnp.einsum('bnm,bmh->bnh', adj_c, support,
                         preferred_element_type=jnp.float32) + b[None]
        mean = jnp.mean(out, axis=(0, 1), keepdims=True)
        var = jnp.mean((out - mean) ** 2, axis=(0, 1), keepdims=True)
        return jnp.maximum((out - mean) / jnp.sqrt(var + 1e-5) * g[None] + be[None], 0.0)

    x = layer(x, params['w1'], params['b1'], params['g1'], params['be1'])
    x = layer(x, params['w2'], params['b2'], params['g2'], params['be2'])
    x = layer(x, params['w3'], params['b3'], params['g3'], params['be3'])
    x = layer(x, params['w4'], params['b4'], params['g4'], params['be4'])
    y = x[:, -1, :] @ params['fcw'] + params['fcb']
    return jax.nn.sigmoid(y) if ifsigmoid else y


if __name__ == "__main__":
    B, N, NFEAT, HIDDEN = 2, 8, 16, 64
    key = jax.random.PRNGKey(0)
    k_in, k_p = jax.random.split(key)

    # Synthetic input: (B, N, N + nfeat); first N columns act as adjacency.
    inp = jax.random.uniform(k_in, (B, N, N + NFEAT), jnp.float32, 0.0, 1.0)
    params = init_params(k_p, NFEAT, HIDDEN)

    out = gcn_regressor_forward(inp, params, ifsigmoid=True)
    out = jax.block_until_ready(out)
    assert out.shape == (B, 1)

    # Tight check vs a reference that matches the kernel's bf16 bmm numerics.
    ref_bf16 = _reference_forward(inp, params, ifsigmoid=True, bmm_dtype=jnp.bfloat16)
    assert jnp.allclose(out, ref_bf16, atol=5e-3, rtol=5e-3), (out, ref_bf16)

    # Loose check vs the exact f32 PyTorch-semantics reference (bf16 drift only).
    ref_f32 = _reference_forward(inp, params, ifsigmoid=True, bmm_dtype=jnp.float32)
    assert jnp.allclose(out, ref_f32, atol=5e-2, rtol=5e-2), (out, ref_f32)

    print("KERNEL_OK")
</pallas_src>

<mosaic_0001>
module attributes {stable_mosaic.version = 11 : i64} {
  func.func @_gcn_kernel(%arg0: memref<2x8x24xf32, #tpu.memory_space<vmem>>, %arg1: memref<16x64xf32, #tpu.memory_space<vmem>>, %arg2: memref<64x64xf32, #tpu.memory_space<vmem>>, %arg3: memref<64x64xf32, #tpu.memory_space<vmem>>, %arg4: memref<64x64xf32, #tpu.memory_space<vmem>>, %arg5: memref<1x64xf32, #tpu.memory_space<vmem>>, %arg6: memref<1x64xf32, #tpu.memory_space<vmem>>, %arg7: memref<1x64xf32, #tpu.memory_space<vmem>>, %arg8: memref<1x64xf32, #tpu.memory_space<vmem>>, %arg9: memref<1x64xf32, #tpu.memory_space<vmem>>, %arg10: memref<1x64xf32, #tpu.memory_space<vmem>>, %arg11: memref<1x64xf32, #tpu.memory_space<vmem>>, %arg12: memref<1x64xf32, #tpu.memory_space<vmem>>, %arg13: memref<1x64xf32, #tpu.memory_space<vmem>>, %arg14: memref<1x1xf32, #tpu.memory_space<vmem>>, %arg15: memref<2x1xf32, #tpu.memory_space<vmem>>) attributes {dimension_semantics = [], scalar_prefetch = 0 : i64, scratch_operands = 0 : i64, tpu.core_type = #tpu.core_type<tc>} {
    %c0 = arith.constant 0 : index
    %c0_0 = arith.constant 0 : index
    %c0_1 = arith.constant 0 : index
    %0 = vector.load %arg0[%c0, %c0_0, %c0_1] : memref<2x8x24xf32, #tpu.memory_space<vmem>>, vector<2x8x24xf32>
    %1 = vector.extract_strided_slice %0 {offsets = [0, 0, 0], sizes = [2, 8, 8], strides = [1, 1, 1]} : vector<2x8x24xf32> to vector<2x8x8xf32>
    %2 = arith.truncf %1 : vector<2x8x8xf32> to vector<2x8x8xbf16>
    %3 = vector.extract_strided_slice %0 {offsets = [0, 0, 8], sizes = [2, 8, 16], strides = [1, 1, 1]} : vector<2x8x24xf32> to vector<2x8x16xf32>
    %4 = vector.shape_cast %3 : vector<2x8x16xf32> to vector<16x16xf32>
    %c0_2 = arith.constant 0 : index
    %c0_3 = arith.constant 0 : index
    %5 = vector.load %arg1[%c0_2, %c0_3] : memref<16x64xf32, #tpu.memory_space<vmem>>, vector<16x64xf32>
    %cst = arith.constant dense<0.000000e+00> : vector<16x64xf32>
    %6 = tpu.matmul %4, %5, %cst {dimension_numbers = #tpu.dot_dimension_numbers<[1], [0], [0], [1], [0, 0, 1, 1], [], []>} : vector<16x16xf32>, vector<16x64xf32>, vector<16x64xf32> -> vector<16x64xf32>
    %7 = vector.shape_cast %6 : vector<16x64xf32> to vector<2x8x64xf32>
    %8 = arith.truncf %7 : vector<2x8x64xf32> to vector<2x8x64xbf16>
    "tpu.trace_start"() <{level = 10 : i32, message = "bnm,bmh->bnh"}> : () -> ()
    %cst_4 = arith.constant dense<0.000000e+00> : vector<2x8x64xf32>
    %9 = tpu.matmul %2, %8, %cst_4 {dimension_numbers = #tpu.dot_dimension_numbers<[2], [1], [1], [2], [0, 0, 0, 1, 1, 2], [0], [0]>} : vector<2x8x8xbf16>, vector<2x8x64xbf16>, vector<2x8x64xf32> -> vector<2x8x64xf32>
    "tpu.trace_stop"() : () -> ()
    %cst_5 = arith.constant dense<0.000000e+00> : vector<64xf32>
    %10 = vector.multi_reduction <add>, %9, %cst_5 [0, 1] : vector<2x8x64xf32> to vector<64xf32>
    %11 = vector.shape_cast %10 : vector<64xf32> to vector<1x1x64xf32>
    %cst_6 = arith.constant 1.600000e+01 : f32
    %12 = vector.broadcast %cst_6 : f32 to vector<1x1x64xf32>
    %13 = arith.divf %11, %12 : vector<1x1x64xf32>
    %14 = arith.mulf %9, %9 : vector<2x8x64xf32>
    %cst_7 = arith.constant dense<0.000000e+00> : vector<64xf32>
    %15 = vector.multi_reduction <add>, %14, %cst_7 [0, 1] : vector<2x8x64xf32> to vector<64xf32>
    %16 = vector.shape_cast %15 : vector<64xf32> to vector<1x1x64xf32>
    %cst_8 = arith.constant 1.600000e+01 : f32
    %17 = vector.broadcast %cst_8 : f32 to vector<1x1x64xf32>
    %18 = arith.divf %16, %17 : vector<1x1x64xf32>
    %19 = arith.mulf %13, %13 : vector<1x1x64xf32>
    %20 = arith.subf %18, %19 : vector<1x1x64xf32>
    %cst_9 = arith.constant 0.000000e+00 : f32
    %21 = vector.broadcast %cst_9 : f32 to vector<1x1x64xf32>
    %22 = arith.maximumf %20, %21 : vector<1x1x64xf32>
    %c0_10 = arith.constant 0 : index
    %c0_11 = arith.constant 0 : index
    %23 = vector.load %arg5[%c0_10, %c0_11] : memref<1x64xf32, #tpu.memory_space<vmem>>, vector<1x64xf32>
    %24 = vector.shape_cast %23 : vector<1x64xf32> to vector<1x1x64xf32>
    %cst_12 = arith.constant 9.99999974E-6 : f32
    %25 = vector.broadcast %cst_12 : f32 to vector<1x1x64xf32>
    %26 = arith.addf %22, %25 : vector<1x1x64xf32>
    %27 = math.rsqrt %26 : vector<1x1x64xf32>
    %28 = arith.mulf %24, %27 : vector<1x1x64xf32>
    %c0_13 = arith.constant 0 : index
    %c0_14 = arith.constant 0 : index
    %29 = vector.load %arg6[%c0_13, %c0_14] : memref<1x64xf32, #tpu.memory_space<vmem>>, vector<1x64xf32>
    %30 = vector.shape_cast %29 : vector<1x64xf32> to vector<1x1x64xf32>
    %31 = arith.mulf %13, %28 : vector<1x1x64xf32>
    %32 = arith.subf %30, %31 : vector<1x1x64xf32>
    %33 = vector.broadcast %28 : vector<1x1x64xf32> to vector<2x8x64xf32>
    %34 = arith.mulf %9, %33 : vector<2x8x64xf32>
    %35 = vector.broadcast %32 : vector<1x1x64xf32> to vector<2x8x64xf32>
    %36 = arith.addf %34, %35 : vector<2x8x64xf32>
    %cst_15 = arith.constant 0.000000e+00 : f32
    %37 = vector.broadcast %cst_15 : f32 to vector<2x8x64xf32>
    %38 = arith.maximumf %36, %37 : vector<2x8x64xf32>
    %39 = vector.shape_cast %38 : vector<2x8x64xf32> to vector<16x64xf32>
    %c0_16 = arith.constant 0 : index
    %c0_17 = arith.constant 0 : index
    %40 = vector.load %arg2[%c0_16, %c0_17] : memref<64x64xf32, #tpu.memory_space<vmem>>, vector<64x64xf32>
    %cst_18 = arith.constant dense<0.000000e+00> : vector<16x64xf32>
    %41 = tpu.matmul %39, %40, %cst_18 {dimension_numbers = #tpu.dot_dimension_numbers<[1], [0], [0], [1], [0, 0, 1, 1], [], []>} : vector<16x64xf32>, vector<64x64xf32>, vector<16x64xf32> -> vector<16x64xf32>
    %42 = vector.shape_cast %41 : vector<16x64xf32> to vector<2x8x64xf32>
    %43 = arith.truncf %42 : vector<2x8x64xf32> to vector<2x8x64xbf16>
    "tpu.trace_start"() <{level = 10 : i32, message = "bnm,bmh->bnh"}> : () -> ()
    %cst_19 = arith.constant dense<0.000000e+00> : vector<2x8x64xf32>
    %44 = tpu.matmul %2, %43, %cst_19 {dimension_numbers = #tpu.dot_dimension_numbers<[2], [1], [1], [2], [0, 0, 0, 1, 1, 2], [0], [0]>} : vector<2x8x8xbf16>, vector<2x8x64xbf16>, vector<2x8x64xf32> -> vector<2x8x64xf32>
    "tpu.trace_stop"() : () -> ()
    %cst_20 = arith.constant dense<0.000000e+00> : vector<64xf32>
    %45 = vector.multi_reduction <add>, %44, %cst_20 [0, 1] : vector<2x8x64xf32> to vector<64xf32>
    %46 = vector.shape_cast %45 : vector<64xf32> to vector<1x1x64xf32>
    %cst_21 = arith.constant 1.600000e+01 : f32
    %47 = vector.broadcast %cst_21 : f32 to vector<1x1x64xf32>
    %48 = arith.divf %46, %47 : vector<1x1x64xf32>
    %49 = arith.mulf %44, %44 : vector<2x8x64xf32>
    %cst_22 = arith.constant dense<0.000000e+00> : vector<64xf32>
    %50 = vector.multi_reduction <add>, %49, %cst_22 [0, 1] : vector<2x8x64xf32> to vector<64xf32>
    %51 = vector.shape_cast %50 : vector<64xf32> to vector<1x1x64xf32>
    %cst_23 = arith.constant 1.600000e+01 : f32
    %52 = vector.broadcast %cst_23 : f32 to vector<1x1x64xf32>
    %53 = arith.divf %51, %52 : vector<1x1x64xf32>
    %54 = arith.mulf %48, %48 : vector<1x1x64xf32>
    %55 = arith.subf %53, %54 : vector<1x1x64xf32>
    %cst_24 = arith.constant 0.000000e+00 : f32
    %56 = vector.broadcast %cst_24 : f32 to vector<1x1x64xf32>
    %57 = arith.maximumf %55, %56 : vector<1x1x64xf32>
    %c0_25 = arith.constant 0 : index
    %c0_26 = arith.constant 0 : index
    %58 = vector.load %arg7[%c0_25, %c0_26] : memref<1x64xf32, #tpu.memory_space<vmem>>, vector<1x64xf32>
    %59 = vector.shape_cast %58 : vector<1x64xf32> to vector<1x1x64xf32>
    %cst_27 = arith.constant 9.99999974E-6 : f32
    %60 = vector.broadcast %cst_27 : f32 to vector<1x1x64xf32>
    %61 = arith.addf %57, %60 : vector<1x1x64xf32>
    %62 = math.rsqrt %61 : vector<1x1x64xf32>
    %63 = arith.mulf %59, %62 : vector<1x1x64xf32>
    %c0_28 = arith.constant 0 : index
    %c0_29 = arith.constant 0 : index
    %64 = vector.load %arg8[%c0_28, %c0_29] : memref<1x64xf32, #tpu.memory_space<vmem>>, vector<1x64xf32>
    %65 = vector.shape_cast %64 : vector<1x64xf32> to vector<1x1x64xf32>
    %66 = arith.mulf %48, %63 : vector<1x1x64xf32>
    %67 = arith.subf %65, %66 : vector<1x1x64xf32>
    %68 = vector.broadcast %63 : vector<1x1x64xf32> to vector<2x8x64xf32>
    %69 = arith.mulf %44, %68 : vector<2x8x64xf32>
    %70 = vector.broadcast %67 : vector<1x1x64xf32> to vector<2x8x64xf32>
    %71 = arith.addf %69, %70 : vector<2x8x64xf32>
    %cst_30 = arith.constant 0.000000e+00 : f32
    %72 = vector.broadcast %cst_30 : f32 to vector<2x8x64xf32>
    %73 = arith.maximumf %71, %72 : vector<2x8x64xf32>
    %74 = vector.shape_cast %73 : vector<2x8x64xf32> to vector<16x64xf32>
    %c0_31 = arith.constant 0 : index
    %c0_32 = arith.constant 0 : index
    %75 = vector.load %arg3[%c0_31, %c0_32] : memref<64x64xf32, #tpu.memory_space<vmem>>, vector<64x64xf32>
    %cst_33 = arith.constant dense<0.000000e+00> : vector<16x64xf32>
    %76 = tpu.matmul %74, %75, %cst_33 {dimension_numbers = #tpu.dot_dimension_numbers<[1], [0], [0], [1], [0, 0, 1, 1], [], []>} : vector<16x64xf32>, vector<64x64xf32>, vector<16x64xf32> -> vector<16x64xf32>
    %77 = vector.shape_cast %76 : vector<16x64xf32> to vector<2x8x64xf32>
    %78 = arith.truncf %77 : vector<2x8x64xf32> to vector<2x8x64xbf16>
    "tpu.trace_start"() <{level = 10 : i32, message = "bnm,bmh->bnh"}> : () -> ()
    %cst_34 = arith.constant dense<0.000000e+00> : vector<2x8x64xf32>
    %79 = tpu.matmul %2, %78, %cst_34 {dimension_numbers = #tpu.dot_dimension_numbers<[2], [1], [1], [2], [0, 0, 0, 1, 1, 2], [0], [0]>} : vector<2x8x8xbf16>, vector<2x8x64xbf16>, vector<2x8x64xf32> -> vector<2x8x64xf32>
    "tpu.trace_stop"() : () -> ()
    %cst_35 = arith.constant dense<0.000000e+00> : vector<64xf32>
    %80 = vector.multi_reduction <add>, %79, %cst_35 [0, 1] : vector<2x8x64xf32> to vector<64xf32>
    %81 = vector.shape_cast %80 : vector<64xf32> to vector<1x1x64xf32>
    %cst_36 = arith.constant 1.600000e+01 : f32
    %82 = vector.broadcast %cst_36 : f32 to vector<1x1x64xf32>
    %83 = arith.divf %81, %82 : vector<1x1x64xf32>
    %84 = arith.mulf %79, %79 : vector<2x8x64xf32>
    %cst_37 = arith.constant dense<0.000000e+00> : vector<64xf32>
    %85 = vector.multi_reduction <add>, %84, %cst_37 [0, 1] : vector<2x8x64xf32> to vector<64xf32>
    %86 = vector.shape_cast %85 : vector<64xf32> to vector<1x1x64xf32>
    %cst_38 = arith.constant 1.600000e+01 : f32
    %87 = vector.broadcast %cst_38 : f32 to vector<1x1x64xf32>
    %88 = arith.divf %86, %87 : vector<1x1x64xf32>
    %89 = arith.mulf %83, %83 : vector<1x1x64xf32>
    %90 = arith.subf %88, %89 : vector<1x1x64xf32>
    %cst_39 = arith.constant 0.000000e+00 : f32
    %91 = vector.broadcast %cst_39 : f32 to vector<1x1x64xf32>
    %92 = arith.maximumf %90, %91 : vector<1x1x64xf32>
    %c0_40 = arith.constant 0 : index
    %c0_41 = arith.constant 0 : index
    %93 = vector.load %arg9[%c0_40, %c0_41] : memref<1x64xf32, #tpu.memory_space<vmem>>, vector<1x64xf32>
    %94 = vector.shape_cast %93 : vector<1x64xf32> to vector<1x1x64xf32>
    %cst_42 = arith.constant 9.99999974E-6 : f32
    %95 = vector.broadcast %cst_42 : f32 to vector<1x1x64xf32>
    %96 = arith.addf %92, %95 : vector<1x1x64xf32>
    %97 = math.rsqrt %96 : vector<1x1x64xf32>
    %98 = arith.mulf %94, %97 : vector<1x1x64xf32>
    %c0_43 = arith.constant 0 : index
    %c0_44 = arith.constant 0 : index
    %99 = vector.load %arg10[%c0_43, %c0_44] : memref<1x64xf32, #tpu.memory_space<vmem>>, vector<1x64xf32>
    %100 = vector.shape_cast %99 : vector<1x64xf32> to vector<1x1x64xf32>
    %101 = arith.mulf %83, %98 : vector<1x1x64xf32>
    %102 = arith.subf %100, %101 : vector<1x1x64xf32>
    %103 = vector.broadcast %98 : vector<1x1x64xf32> to vector<2x8x64xf32>
    %104 = arith.mulf %79, %103 : vector<2x8x64xf32>
    %105 = vector.broadcast %102 : vector<1x1x64xf32> to vector<2x8x64xf32>
    %106 = arith.addf %104, %105 : vector<2x8x64xf32>
    %cst_45 = arith.constant 0.000000e+00 : f32
    %107 = vector.broadcast %cst_45 : f32 to vector<2x8x64xf32>
    %108 = arith.maximumf %106, %107 : vector<2x8x64xf32>
    %109 = vector.shape_cast %108 : vector<2x8x64xf32> to vector<16x64xf32>
    %c0_46 = arith.constant 0 : index
    %c0_47 = arith.constant 0 : index
    %110 = vector.load %arg4[%c0_46, %c0_47] : memref<64x64xf32, #tpu.memory_space<vmem>>, vector<64x64xf32>
    %cst_48 = arith.constant dense<0.000000e+00> : vector<16x64xf32>
    %111 = tpu.matmul %109, %110, %cst_48 {dimension_numbers = #tpu.dot_dimension_numbers<[1], [0], [0], [1], [0, 0, 1, 1], [], []>} : vector<16x64xf32>, vector<64x64xf32>, vector<16x64xf32> -> vector<16x64xf32>
    %112 = vector.shape_cast %111 : vector<16x64xf32> to vector<2x8x64xf32>
    %113 = arith.truncf %112 : vector<2x8x64xf32> to vector<2x8x64xbf16>
    "tpu.trace_start"() <{level = 10 : i32, message = "bnm,bmh->bnh"}> : () -> ()
    %cst_49 = arith.constant dense<0.000000e+00> : vector<2x8x64xf32>
    %114 = tpu.matmul %2, %113, %cst_49 {dimension_numbers = #tpu.dot_dimension_numbers<[2], [1], [1], [2], [0, 0, 0, 1, 1, 2], [0], [0]>} : vector<2x8x8xbf16>, vector<2x8x64xbf16>, vector<2x8x64xf32> -> vector<2x8x64xf32>
    "tpu.trace_stop"() : () -> ()
    %cst_50 = arith.constant dense<0.000000e+00> : vector<64xf32>
    %115 = vector.multi_reduction <add>, %114, %cst_50 [0, 1] : vector<2x8x64xf32> to vector<64xf32>
    %116 = vector.shape_cast %115 : vector<64xf32> to vector<1x1x64xf32>
    %cst_51 = arith.constant 1.600000e+01 : f32
    %117 = vector.broadcast %cst_51 : f32 to vector<1x1x64xf32>
    %118 = arith.divf %116, %117 : vector<1x1x64xf32>
    %119 = arith.mulf %114, %114 : vector<2x8x64xf32>
    %cst_52 = arith.constant dense<0.000000e+00> : vector<64xf32>
    %120 = vector.multi_reduction <add>, %119, %cst_52 [0, 1] : vector<2x8x64xf32> to vector<64xf32>
    %121 = vector.shape_cast %120 : vector<64xf32> to vector<1x1x64xf32>
    %cst_53 = arith.constant 1.600000e+01 : f32
    %122 = vector.broadcast %cst_53 : f32 to vector<1x1x64xf32>
    %123 = arith.divf %121, %122 : vector<1x1x64xf32>
    %124 = arith.mulf %118, %118 : vector<1x1x64xf32>
    %125 = arith.subf %123, %124 : vector<1x1x64xf32>
    %cst_54 = arith.constant 0.000000e+00 : f32
    %126 = vector.broadcast %cst_54 : f32 to vector<1x1x64xf32>
    %127 = arith.maximumf %125, %126 : vector<1x1x64xf32>
    %c0_55 = arith.constant 0 : index
    %c0_56 = arith.constant 0 : index
    %128 = vector.load %arg11[%c0_55, %c0_56] : memref<1x64xf32, #tpu.memory_space<vmem>>, vector<1x64xf32>
    %129 = vector.shape_cast %128 : vector<1x64xf32> to vector<1x1x64xf32>
    %cst_57 = arith.constant 9.99999974E-6 : f32
    %130 = vector.broadcast %cst_57 : f32 to vector<1x1x64xf32>
    %131 = arith.addf %127, %130 : vector<1x1x64xf32>
    %132 = math.rsqrt %131 : vector<1x1x64xf32>
    %133 = arith.mulf %129, %132 : vector<1x1x64xf32>
    %c0_58 = arith.constant 0 : index
    %c0_59 = arith.constant 0 : index
    %134 = vector.load %arg12[%c0_58, %c0_59] : memref<1x64xf32, #tpu.memory_space<vmem>>, vector<1x64xf32>
    %135 = vector.shape_cast %134 : vector<1x64xf32> to vector<1x1x64xf32>
    %136 = arith.mulf %118, %133 : vector<1x1x64xf32>
    %137 = arith.subf %135, %136 : vector<1x1x64xf32>
    %138 = vector.extract_strided_slice %114 {offsets = [0, 7, 0], sizes = [2, 1, 64], strides = [1, 1, 1]} : vector<2x8x64xf32> to vector<2x1x64xf32>
    %139 = vector.shape_cast %138 : vector<2x1x64xf32> to vector<2x64xf32>
    %140 = vector.shape_cast %133 : vector<1x1x64xf32> to vector<1x64xf32>
    %141 = vector.broadcast %140 : vector<1x64xf32> to vector<2x64xf32>
    %142 = arith.mulf %139, %141 : vector<2x64xf32>
    %143 = vector.shape_cast %137 : vector<1x1x64xf32> to vector<1x64xf32>
    %144 = vector.broadcast %143 : vector<1x64xf32> to vector<2x64xf32>
    %145 = arith.addf %142, %144 : vector<2x64xf32>
    %cst_60 = arith.constant 0.000000e+00 : f32
    %146 = vector.broadcast %cst_60 : f32 to vector<2x64xf32>
    %147 = arith.maximumf %145, %146 : vector<2x64xf32>
    %c0_61 = arith.constant 0 : index
    %c0_62 = arith.constant 0 : index
    %148 = vector.load %arg13[%c0_61, %c0_62] : memref<1x64xf32, #tpu.memory_space<vmem>>, vector<1x64xf32>
    %149 = vector.broadcast %148 : vector<1x64xf32> to vector<2x64xf32>
    %150 = arith.mulf %147, %149 : vector<2x64xf32>
    %cst_63 = arith.constant dense<0.000000e+00> : vector<2xf32>
    %151 = vector.multi_reduction <add>, %150, %cst_63 [1] : vector<2x64xf32> to vector<2xf32>
    %152 = vector.shape_cast %151 : vector<2xf32> to vector<2x1xf32>
    %c0_64 = arith.constant 0 : index
    %c0_65 = arith.constant 0 : index
    %153 = vector.load %arg14[%c0_64, %c0_65] : memref<1x1xf32, #tpu.memory_space<vmem>>, vector<1x1xf32>
    %154 = vector.broadcast %153 : vector<1x1xf32> to vector<2x1xf32>
    %155 = arith.addf %152, %154 : vector<2x1xf32>
    %156 = arith.negf %155 : vector<2x1xf32>
    %157 = math.exp %156 : vector<2x1xf32>
    %cst_66 = arith.constant 1.000000e+00 : f32
    %158 = vector.broadcast %cst_66 : f32 to vector<2x1xf32>
    %159 = arith.addf %158, %157 : vector<2x1xf32>
    %160 = arith.divf %158, %159 : vector<2x1xf32>
    %c0_67 = arith.constant 0 : index
    %c0_68 = arith.constant 0 : index
    %161 = vector.load %arg15[%c0_67, %c0_68] : memref<2x1xf32, #tpu.memory_space<vmem>>, vector<2x1xf32>
    tpu.vector_store %arg15[%c0_67, %c0_68], %160 {strides = array<i32>} : memref<2x1xf32, #tpu.memory_space<vmem>>, vector<2x1xf32>,
    return
  }
}

</mosaic_0001>

<bundles_post_ra>
// kernel: tpu_custom_call.1
= control target key start
LH: loop header
LB: loop body
LE: loop exit
PB: predicated region body
PF: predicated region fallthrough
CT: control target
= control target key end

     0   :  { %s1650_s0 = inlined_call_operand.hbm [shape: f32[2,8,24], index: 0, kind: input, shape index: {}]   ;;  %s1651_s1 = inlined_call_operand.hbm [shape: f32[16,64], index: 1, kind: input, shape index: {}]   ;;  %s1652_s2 = inlined_call_operand.hbm [shape: f32[64,64], index: 2, kind: input, shape index: {}]   ;;  %s1653_s3 = inlined_call_operand.hbm [shape: f32[64,64], index: 3, kind: input, shape index: {}]   ;;  %s1654_s4 = inlined_call_operand.hbm [shape: f32[64,64], index: 4, kind: input, shape index: {}]   ;;  %s1655_s5 = inlined_call_operand.vmem [shape: f32[1,64], index: 5, kind: input, shape index: {}]   ;;  %s1656_s6 = inlined_call_operand.vmem [shape: f32[1,64], index: 6, kind: input, shape index: {}]   ;;  %s1657_s7 = inlined_call_operand.vmem [shape: f32[1,64], index: 7, kind: input, shape index: {}]   ;;  %s1658_s8 = inlined_call_operand.vmem [shape: f32[1,64], index: 8, kind: input, shape index: {}]   ;;  %s1659_s9 = inlined_call_operand.vmem [shape: f32[1,64], index: 9, kind: input, shape index: {}]   ;;  %s1660_s10 = inlined_call_operand.vmem [shape: f32[1,64], index: 10, kind: input, shape index: {}]   ;;  %s1661_s11 = inlined_call_operand.vmem [shape: f32[1,64], index: 11, kind: input, shape index: {}]   ;;  %s1662_s12 = inlined_call_operand.vmem [shape: f32[1,64], index: 12, kind: input, shape index: {}]   ;;  %s1663_s13 = inlined_call_operand.vmem [shape: f32[1,64], index: 13, kind: input, shape index: {}]   ;;  %s1664_s14 = inlined_call_operand.<no memory space> [shape: f32[1,1], index: 14, kind: input, shape index: {}]   ;;  %s1665_s15 = inlined_call_operand.vmem [shape: f32[2,1], index: 15, kind: output, shape index: {}]  }
   0x1   :  { %v20_v0 = vstv %s1664_s14 }
   0x2   :  { %21 = vst [vmem:[#allocation2] sm:$0x1] %v20_v0 }
   0x3   :  { %22 = vsyncpa [#allocation4], 0 }
   0x4   :  { %23 = vsyncpa [#allocation6], 0 }
   0x5   :  { %24 = vsyncpa [#allocation9], 0  ;;  %s1410_s20 = smov [#allocation5]   ;;  %s1411_s22 = smov [#allocation8]  }
   0x6   :  { %s42_s21 = sshll.u32 %s1410_s20, 4  ;;  %s66_s23 = sshll.u32 %s1411_s22, 4  ;;  %s43_s21 = int_to_ptr.vmem [resolvable:$true] %s42_s21  ;;  %s67_s23 = int_to_ptr.vmem [resolvable:$true] %s66_s23 }
   0x7   :  { %s1312_s24 = scalar_lea.vmem %s43_s21, 256  ;;  %p1317_p1 = scmp.lt.s32.totalorder %s43_s21, %s43_s21 }
   0x8   :  { %p1313_p0 = scmp.ne.s32.totalorder %s43_s21, %s1312_s24  ;;  %p1318_p2 = scmp.lt.s32.totalorder %s1312_s24, %s1312_s24 }
   0xa   :  { %p1319_p3 = por %p1318_p2, %p1317_p1 }
   0xc   :  { %p1320_p4 = pnand %p1319_p3, %p1313_p0 }
   0xe   :  { %1323 = shalt.err (!%p1320_p4)
}
   0xf   :  { %s1412_s25 = smov 128   ;;  %s1413_s26 = smov 8  }
  0x10   :  { %48 = dma.hbm_to_vmem [thread:$0]  %s1651_s1, 256, %s43_s21, [#allocation6], %s1412_s25, %s1412_s25, %s1413_s26  }
  0x11   :  { %s1332_s28 = scalar_lea.vmem %s67_s23, 1024  ;;  %p1337_p6 = scmp.lt.s32.totalorder %s67_s23, %s67_s23 }
  0x12   :  { %p1333_p5 = scmp.ne.s32.totalorder %s67_s23, %s1332_s28  ;;  %p1338_p7 = scmp.lt.s32.totalorder %s1332_s28, %s1332_s28 }
  0x14   :  { %p1339_p8 = por %p1338_p7, %p1337_p6 }
  0x16   :  { %p1340_p9 = pnand %p1339_p8, %p1333_p5 }
  0x18   :  { %1343 = shalt.err (!%p1340_p9)
}
  0x19   :  { %72 = dma.hbm_to_vmem [thread:$0]  %s1653_s3, 1024, %s67_s23, [#allocation9], %s1412_s25, %s1412_s25, %s1413_s26  }
  0x1a   :  { %s1414_s16 = smov [#allocation3]   ;;  %s1415_s18 = smov [#allocation7]  }
  0x1b   :  { %s30_s17 = sshll.u32 %s1414_s16, 4  ;;  %s54_s19 = sshll.u32 %s1415_s18, 4  ;;  %s31_s17 = int_to_ptr.vmem [resolvable:$true] %s30_s17  ;;  %s55_s19 = int_to_ptr.vmem [resolvable:$true] %s54_s19 }
  0x1c   :  { %s1352_s1 = scalar_lea.vmem %s31_s17, 256  ;;  %p1357_p11 = scmp.lt.s32.totalorder %s31_s17, %s31_s17 }
  0x1d   :  { %p1353_p10 = scmp.ne.s32.totalorder %s31_s17, %s1352_s1  ;;  %p1358_p12 = scmp.lt.s32.totalorder %s1352_s1, %s1352_s1 }
  0x1f   :  { %p1359_p13 = por %p1358_p12, %p1357_p11 }
  0x21   :  { %p1360_p0 = pnand %p1359_p13, %p1353_p10 }
  0x23   :  { %1363 = shalt.err (!%p1360_p0)
}
  0x24   :  { %36 = dma.hbm_to_vmem [thread:$0]  %s1650_s0, 256, %s31_s17, [#allocation4], %s1412_s25, %s1412_s25, %s1413_s26  }
  0x25   :  { %s1372_s3 = scalar_lea.vmem %s55_s19, 1024  ;;  %p1377_p2 = scmp.lt.s32.totalorder %s55_s19, %s55_s19 }
  0x26   :  { %p1373_p1 = scmp.ne.s32.totalorder %s55_s19, %s1372_s3  ;;  %p1378_p3 = scmp.lt.s32.totalorder %s1372_s3, %s1372_s3 }
  0x28   :  { %p1379_p4 = por %p1378_p3, %p1377_p2 }
  0x2a   :  { %p1380_p5 = pnand %p1379_p4, %p1373_p1 }
  0x2c   :  { %1383 = shalt.err (!%p1380_p5)
}
  0x2d   :  { %60 = dma.hbm_to_vmem [thread:$0]  %s1652_s2, 1024, %s55_s19, [#allocation6], %s1412_s25, %s1412_s25, %s1413_s26  }
  0x2e   :  { %s1416_s24 = smov [#allocation10]  }
  0x2f   :  { %s78_s14 = sshll.u32 %s1416_s24, 4  ;;  %s79_s14 = int_to_ptr.vmem [resolvable:$true] %s78_s14 }
  0x30   :  { %s1392_s27 = scalar_lea.vmem %s79_s14, 1024  ;;  %p1397_p7 = scmp.lt.s32.totalorder %s79_s14, %s79_s14 }
  0x31   :  { %p1393_p6 = scmp.ne.s32.totalorder %s79_s14, %s1392_s27  ;;  %p1398_p8 = scmp.lt.s32.totalorder %s1392_s27, %s1392_s27 }
  0x33   :  { %p1399_p9 = por %p1398_p8, %p1397_p7 }
  0x35   :  { %p1400_p10 = pnand %p1399_p9, %p1393_p6 }
  0x37   :  { %1403 = shalt.err (!%p1400_p10)
}
  0x38   :  { %84 = dma.hbm_to_vmem [thread:$0]  %s1654_s4, 1024, %s79_s14, [#allocation9], %s1412_s25, %s1412_s25, %s1413_s26  }
  0x39   :  { %1404 = dma.done.wait [#allocation4], 256  }
  0x3a   :  { %1405 = vsyncadd [#allocation4], 4294967040 }
  0x3b   :  { %1406 = dma.done.wait [#allocation6], 1280  }
  0x3c   :  { %1407 = vsyncadd [#allocation6], 4294966016 }
  0x3d   :  { %1408 = dma.done.wait [#allocation9], 2048  }
  0x3e   :  { %1409 = vsyncadd [#allocation9], 4294965248  ;;  %v121_v1 = vld [vmem:[#allocation3] sm:$0xff]  ;;  %v126_v2 = vld [vmem:[#allocation5 + $0x8] sm:$0xff]  ;;  %s1417_s2 = smov 120   ;;  %vm133_vm0 = vcmask 130048   ;;  %v344_v58 = vlaneseq }
  0x3f   :  { %129 = vrot.lane.b32.xlu0 %v121_v1, %s1417_s2  ;;  %1166 = vmatprep.subr.mxu1 %v126_v2  ;;  %v125_v3 = vld [vmem:[#allocation5] sm:$0xff]  ;;  %v122_v4 = vld [vmem:[#allocation3 + $0x8] sm:$0xff]  ;;  %v1418_v7 = vmov 0.0   ;;  %vm1419_vm1 = vmmov 0   ;;  %vm219_vm2 = vcmask 1043456   ;;  %vm215_vm3 = vcmask 64512  }
  0x40   :  { %1167 = vmatpush3.msra.mxu1 %v126_v2  ;;  %1179 = vmatprep.subr.bf16.mxu0 %v1418_v7  ;;  %v1539_v11 = vpack.c.bf16 %v122_v4, %v122_v4  ;;  %v1542_v14 = vpack.c.bf16 %v121_v1, %v121_v1  ;;  %v368_v16 = vld [vmem:[#allocation7 + $0x38] sm:$0xff]  ;;  %v367_v17 = vld [vmem:[#allocation7 + $0x30] sm:$0xff]  ;;  %v366_v18 = vld [vmem:[#allocation7 + $0x28] sm:$0xff]  ;;  %vm309_vm4 = vcmask 523264   ;;  %v345_v59 = vshrl.u32 %v344_v58, 7 }
  0x41   :  { %1168 = vmatprep.subr.mxu1 %v125_v3  ;;  %1181 = vmatprep.mubr.msk.bf16.mxu0 %vm1419_vm1, %v1418_v7  ;;  %v365_v19 = vld [vmem:[#allocation7 + $0x20] sm:$0xff]  ;;  %v364_v20 = vld [vmem:[#allocation7 + $0x18] sm:$0xff]  ;;  %v363_v21 = vld [vmem:[#allocation7 + $0x10] sm:$0xff]  ;;  %vm1056_vm5 = vcmask 523271   ;;  %vm1060_vm6 = vcmask 516096   ;;  %vm1085_vm7 = vcmask 7175  }
  0x42   :  { %1169 = vmatpush3.msra.mxu1 %v125_v3  ;;  %v362_v22 = vld [vmem:[#allocation7 + $0x8] sm:$0xff]  ;;  %v361_v23 = vld [vmem:[#allocation7] sm:$0xff]  ;;  %v336_v60 = vld [vmem:[%s1655_s5] sm:$0x1]  ;;  %v1559_v61 = vsub.s32 0, %v345_v59  ;;  %vm1087_vm8 = vcmask 0  }
  0x43   :  { %131 = vrot.lane.b32.xlu0 %v122_v4, %s1417_s2  ;;  %1173 = vmatprep.subr.bf16.mxu1 %v1418_v7  ;;  %v340_v0 = vld [vmem:[%s1656_s6] sm:$0x1] }
  0xb1   :  { %v130_v5 = vpop.permute.xlu0 %129 }
  0xb2   :  { %1170 = vmatprep.mubr.msk.f32.mxu1 %vm133_vm0, %v130_v5 }
  0xb5   :  { %v132_v6 = vpop.permute.xlu0 %131 }
  0xb6   :  { %1171 = vmatmul.mubr.msk.f32.vlgmr.msra.gmra.mxu1 %vm133_vm0, %v132_v6 }
  0xb7   :  { %1175 = vmatprep.mubr.msk.bf16.mxu1 %vm1419_vm1, %v1418_v7 }
 0x176   :  { %v1172_v8 = vpop.f32.mrf.mxu1 }
 0x177   :  { %v214_v9 = vpack.c.bf16 %v1172_v8, %v1172_v8 }
 0x178   :  { %v204_v10 = vpop.f32.mrf.mxu1 }
 0x179   :  { %v213_v12 = vpack.c.bf16 %v204_v10, %v204_v10  ;;  %v267_v13 = vsel %vm219_vm2, %v214_v9, 0 }
 0x17a   :  { %1180 = vmatpush3.bf16.msra.mxu0 %v267_v13 }
 0x17b   :  { %v221_v15 = vsel %vm219_vm2, %v213_v12, 0  ;;  %1204 = vmatprep.subr.bf16.mxu0 %v1418_v7 }
 0x17c   :  { %1174 = vmatpush3.bf16.msra.mxu1 %v221_v15 }
 0x17d   :  { %1182 = vmatmul.mubr.msk.bf16.vlgmr.msra.gmra.mxu0 %vm215_vm3, %v1539_v11  ;;  %1185 = vmatprep.subr.mxu1 %v368_v16 }
 0x17e   :  { %1206 = vmatprep.mubr.msk.bf16.mxu0 %vm1419_vm1, %v1418_v7 }
 0x17f   :  { %1176 = vmatmul.mubr.msk.bf16.vlgmr.msra.gmra.mxu1 %vm215_vm3, %v1542_v14 }
 0x180   :  { %1186 = vmatpush3.msra.mxu1 %v368_v16 }
 0x181   :  { %1187 = vmatprep.subr.mxu1 %v367_v17 }
 0x182   :  { %1188 = vmatpush3.msra.mxu1 %v367_v17 }
 0x183   :  { %1189 = vmatprep.subr.mxu1 %v366_v18 }
 0x184   :  { %1190 = vmatpush3.msra.mxu1 %v366_v18 }
 0x185   :  { %1191 = vmatprep.subr.mxu1 %v365_v19 }
 0x186   :  { %1192 = vmatpush3.msra.mxu1 %v365_v19 }
 0x187   :  { %1193 = vmatprep.subr.mxu1 %v364_v20 }
 0x188   :  { %1194 = vmatpush3.msra.mxu1 %v364_v20  ;;  %v595_v20 = vld [vmem:[#allocation8 + $0x38] sm:$0xff] }
 0x189   :  { %1195 = vmatprep.subr.mxu1 %v363_v21 }
 0x18a   :  { %1196 = vmatpush3.msra.mxu1 %v363_v21  ;;  %v594_v21 = vld [vmem:[#allocation8 + $0x30] sm:$0xff] }
 0x18b   :  { %1197 = vmatprep.subr.mxu1 %v362_v22 }
 0x18c   :  { %1198 = vmatpush3.msra.mxu1 %v362_v22  ;;  %v593_v22 = vld [vmem:[#allocation8 + $0x28] sm:$0xff] }
 0x18d   :  { %1199 = vmatprep.subr.mxu1 %v361_v23 }
 0x18e   :  { %1200 = vmatpush3.msra.mxu1 %v361_v23  ;;  %v592_v23 = vld [vmem:[#allocation8 + $0x20] sm:$0xff] }
 0x18f   :  { %1216 = vmatprep.subr.mxu1 %v595_v20 }
 0x23d   :  { %v303_v24 = vpop.f32.mrf.mxu0 }
 0x23e   :  { %v311_v25 = vsel %vm309_vm4, %v303_v24, 0.0  ;;  %v322_v26 = vmul.f32 %v303_v24, %v303_v24 }
 0x23f   :  { %v257_v27 = vpop.f32.mrf.mxu1  ;;  %v1183_v28 = vpop.f32.mrf.mxu0 }
 0x240   :  { %v324_v29 = vsel %vm309_vm4, %v322_v26, 0.0  ;;  %v310_v30 = vsel %vm309_vm4, %v257_v27, 0.0  ;;  %v321_v31 = vmul.f32 %v257_v27, %v257_v27  ;;  %v589_v26 = vld [vmem:[#allocation8 + $0x8] sm:$0xff] }
 0x241   :  { %v312_v32 = vadd.f32 %v311_v25, %v310_v30  ;;  %v1177_v33 = vpop.f32.mrf.mxu1  ;;  %v306_v34 = vpop.f32.mrf.mxu0  ;;  %v590_v25 = vld [vmem:[#allocation8 + $0x10] sm:$0xff] }
 0x242   :  { %v323_v35 = vsel %vm309_vm4, %v321_v31, 0.0 }
 0x243   :  { %v313_v36 = vrot.slane %v312_v32, 4  ;;  %v325_v37 = vadd.f32 %v324_v29, %v323_v35  ;;  %v260_v38 = vpop.f32.mrf.mxu1  ;;  %v1184_v39 = vpop.f32.mrf.mxu0 }
 0x245   :  { %v314_v40 = vadd.f32 %v313_v36, %v312_v32  ;;  %v326_v41 = vrot.slane %v325_v37, 4  ;;  %v1178_v42 = vpop.f32.mrf.mxu1 }
 0x247   :  { %v315_v43 = vrot.slane %v314_v40, 2  ;;  %v327_v44 = vadd.f32 %v326_v41, %v325_v37 }
 0x249   :  { %v316_v45 = vadd.f32 %v315_v43, %v314_v40  ;;  %v328_v46 = vrot.slane %v327_v44, 2 }
 0x24b   :  { %v317_v47 = vrot.slane %v316_v45, 1  ;;  %v329_v48 = vadd.f32 %v328_v46, %v327_v44 }
 0x24d   :  { %v318_v49 = vadd.f32 %v317_v47, %v316_v45  ;;  %v330_v50 = vrot.slane %v329_v48, 1 }
 0x24f   :  { %v320_v51 = vmul.f32 0.0625, %v318_v49  ;;  %v331_v52 = vadd.f32 %v330_v50, %v329_v48 }
 0x251   :  { %v332_v53 = vmul.f32 0.0625, %v331_v52  ;;  %v333_v54 = vmul.f32 %v320_v51, %v320_v51 }
 0x253   :  { %v334_v55 = vsub.f32 %v332_v53, %v333_v54 }
 0x255   :  { %v335_v56 = vmax.f32 %v334_v55, 0.0 }
 0x257   :  { %v337_v57 = vadd.f32 1e-05, %v335_v56 }
 0x259   :  { %1288 = vrsqrt.f32 %v337_v57 }
 0x266   :  { %v1289_v62 = vpop.eup %1288 }
 0x267   :  { %v339_v63 = vmul.f32 %v1289_v62, %v336_v60 }
 0x269   :  { %v341_v1 = vmul.f32 %v339_v63, %v320_v51  ;;  %v347_v2 = vrot.slane %v339_v63, %v1559_v61  ;;  %v563_v63 = vld [vmem:[%s1657_s7] sm:$0x1] }
 0x26b   :  { %v342_v3 = vsub.f32 %v340_v0, %v341_v1  ;;  %v349_v4 = vmul.f32 %v347_v2, %v257_v27  ;;  %v350_v5 = vmul.f32 %v347_v2, %v303_v24  ;;  %v591_v24 = vld [vmem:[#allocation8 + $0x18] sm:$0xff]  ;;  %v588_v27 = vld [vmem:[#allocation8] sm:$0xff] }
 0x26c   :  { %v567_v2 = vld [vmem:[%s1658_s8] sm:$0x1] }
 0x26d   :  { %v355_v6 = vrot.slane %v342_v3, %v1559_v61 }
 0x26f   :  { %v357_v8 = vadd.f32 %v355_v6, %v349_v4  ;;  %v358_v9 = vadd.f32 %v355_v6, %v350_v5 }
 0x271   :  { %v359_v10 = vmax.f32 %v357_v8, 0.0  ;;  %v360_v12 = vmax.f32 %v358_v9, 0.0 }
 0x273   :  { %1201 = vmatprep.mubr.msk.f32.mxu1 %vm309_vm4, %v359_v10 }
 0x274   :  { %1202 = vmatmul.mubr.msk.f32.vlgmr.msra.gmra.mxu1 %vm309_vm4, %v360_v12 }
 0x275   :  { %1217 = vmatpush3.msra.mxu1 %v595_v20 }
 0x276   :  { %1218 = vmatprep.subr.mxu1 %v594_v21 }
 0x277   :  { %1219 = vmatpush3.msra.mxu1 %v594_v21 }
 0x278   :  { %1220 = vmatprep.subr.mxu1 %v593_v22 }
 0x279   :  { %1221 = vmatpush3.msra.mxu1 %v593_v22  ;;  %v822_v22 = vld [vmem:[#allocation10 + $0x38] sm:$0xff] }
 0x27a   :  { %1222 = vmatprep.subr.mxu1 %v592_v23 }
 0x27b   :  { %1223 = vmatpush3.msra.mxu1 %v592_v23  ;;  %v821_v23 = vld [vmem:[#allocation10 + $0x30] sm:$0xff] }
 0x27c   :  { %1224 = vmatprep.subr.mxu1 %v591_v24 }
 0x27d   :  { %1225 = vmatpush3.msra.mxu1 %v591_v24  ;;  %v820_v24 = vld [vmem:[#allocation10 + $0x28] sm:$0xff] }
 0x27e   :  { %1226 = vmatprep.subr.mxu1 %v590_v25 }
 0x27f   :  { %1227 = vmatpush3.msra.mxu1 %v590_v25  ;;  %v819_v25 = vld [vmem:[#allocation10 + $0x20] sm:$0xff] }
 0x280   :  { %1228 = vmatprep.subr.mxu1 %v589_v26 }
 0x281   :  { %1229 = vmatpush3.msra.mxu1 %v589_v26  ;;  %v818_v26 = vld [vmem:[#allocation10 + $0x18] sm:$0xff] }
 0x282   :  { %1230 = vmatprep.subr.mxu1 %v588_v27 }
 0x283   :  { %1231 = vmatpush3.msra.mxu1 %v588_v27  ;;  %v817_v27 = vld [vmem:[#allocation10 + $0x10] sm:$0xff] }
 0x284   :  { %1247 = vmatprep.subr.mxu1 %v822_v22 }
 0x334   :  { %v1203_v13 = vpop.f32.mrf.mxu1 }
 0x335   :  { %v451_v17 = vpack.c.bf16 %v1203_v13, %v1203_v13 }
 0x336   :  { %v441_v15 = vpop.f32.mrf.mxu1 }
 0x337   :  { %v450_v16 = vpack.c.bf16 %v441_v15, %v441_v15  ;;  %v496_v19 = vsel %vm219_vm2, %v451_v17, 0 }
 0x339   :  { %v453_v18 = vsel %vm219_vm2, %v450_v16, 0 }
 0x33a   :  { %1205 = vmatpush3.bf16.msra.mxu0 %v453_v18 }
 0x33b   :  { %1210 = vmatprep.subr.bf16.mxu0 %v1418_v7 }
 0x33d   :  { %1207 = vmatmul.mubr.msk.bf16.vlgmr.msra.gmra.mxu0 %vm215_vm3, %v1542_v14 }
 0x33e   :  { %1211 = vmatpush3.bf16.msra.mxu0 %v496_v19  ;;  %1212 = vmatprep.mubr.msk.bf16.mxu0 %vm1419_vm1, %v1418_v7 }
 0x33f   :  { %1235 = vmatprep.subr.bf16.mxu0 %v1418_v7 }
 0x345   :  { %1213 = vmatmul.mubr.msk.bf16.vlgmr.msra.gmra.mxu0 %vm215_vm3, %v1539_v11 }
 0x346   :  { %1237 = vmatprep.mubr.msk.bf16.mxu0 %vm1419_vm1, %v1418_v7 }
 0x3fd   :  { %v489_v28 = vpop.f32.mrf.mxu0 }
 0x3fe   :  { %v548_v32 = vmul.f32 %v489_v28, %v489_v28  ;;  %v538_v34 = vsel %vm309_vm4, %v489_v28, 0.0 }
 0x3ff   :  { %v1208_v29 = vpop.f32.mrf.mxu0 }
 0x400   :  { %v550_v39 = vsel %vm309_vm4, %v548_v32, 0.0  ;;  %v815_v29 = vld [vmem:[#allocation10] sm:$0xff] }
 0x401   :  { %v492_v30 = vpop.f32.mrf.mxu0 }
 0x403   :  { %v1209_v31 = vpop.f32.mrf.mxu0 }
 0x405   :  { %v532_v33 = vpop.f32.mrf.mxu0 }
 0x406   :  { %v539_v35 = vsel %vm309_vm4, %v532_v33, 0.0  ;;  %v549_v36 = vmul.f32 %v532_v33, %v532_v33 }
 0x407   :  { %v540_v37 = vadd.f32 %v539_v35, %v538_v34  ;;  %v1214_v38 = vpop.f32.mrf.mxu0 }
 0x408   :  { %v551_v40 = vsel %vm309_vm4, %v549_v36, 0.0 }
 0x409   :  { %v541_v41 = vrot.slane %v540_v37, 4  ;;  %v552_v42 = vadd.f32 %v551_v40, %v550_v39  ;;  %v535_v43 = vpop.f32.mrf.mxu0 }
 0x40b   :  { %v542_v44 = vadd.f32 %v541_v41, %v540_v37  ;;  %v553_v45 = vrot.slane %v552_v42, 4  ;;  %v1215_v46 = vpop.f32.mrf.mxu0 }
 0x40d   :  { %v543_v47 = vrot.slane %v542_v44, 2  ;;  %v554_v48 = vadd.f32 %v553_v45, %v552_v42 }
 0x40f   :  { %v544_v49 = vadd.f32 %v543_v47, %v542_v44  ;;  %v555_v50 = vrot.slane %v554_v48, 2 }
 0x411   :  { %v545_v51 = vrot.slane %v544_v49, 1  ;;  %v556_v52 = vadd.f32 %v555_v50, %v554_v48 }
 0x413   :  { %v546_v53 = vadd.f32 %v545_v51, %v544_v49  ;;  %v557_v54 = vrot.slane %v556_v52, 1 }
 0x415   :  { %v547_v55 = vmul.f32 0.0625, %v546_v53  ;;  %v558_v56 = vadd.f32 %v557_v54, %v556_v52 }
 0x417   :  { %v559_v57 = vmul.f32 0.0625, %v558_v56  ;;  %v560_v58 = vmul.f32 %v547_v55, %v547_v55 }
 0x419   :  { %v561_v59 = vsub.f32 %v559_v57, %v560_v58 }
 0x41b   :  { %v562_v60 = vmax.f32 %v561_v59, 0.0 }
 0x41d   :  { %v564_v62 = vadd.f32 1e-05, %v562_v60 }
 0x41f   :  { %1290 = vrsqrt.f32 %v564_v62 }
 0x42c   :  { %v1291_v0 = vpop.eup %1290 }
 0x42d   :  { %v566_v1 = vmul.f32 %v1291_v0, %v563_v63 }
 0x42f   :  { %v568_v3 = vmul.f32 %v566_v1, %v547_v55  ;;  %v574_v4 = vrot.slane %v566_v1, %v1559_v61  ;;  %v790_v1 = vld [vmem:[%s1659_s9] sm:$0x1] }
 0x431   :  { %v569_v5 = vsub.f32 %v567_v2, %v568_v3  ;;  %v576_v6 = vmul.f32 %v574_v4, %v489_v28  ;;  %v577_v8 = vmul.f32 %v574_v4, %v532_v33  ;;  %v816_v28 = vld [vmem:[#allocation10 + $0x8] sm:$0xff]  ;;  %v794_v4 = vld [vmem:[%s1660_s10] sm:$0x1] }
 0x433   :  { %v582_v9 = vrot.slane %v569_v5, %v1559_v61 }
 0x435   :  { %v585_v10 = vadd.f32 %v582_v9, %v577_v8  ;;  %v584_v12 = vadd.f32 %v582_v9, %v576_v6 }
 0x437   :  { %v587_v13 = vmax.f32 %v585_v10, 0.0  ;;  %v586_v15 = vmax.f32 %v584_v12, 0.0 }
 0x439   :  { %1232 = vmatprep.mubr.msk.f32.mxu1 %vm309_vm4, %v586_v15 }
 0x43a   :  { %1233 = vmatmul.mubr.msk.f32.vlgmr.msra.gmra.mxu1 %vm309_vm4, %v587_v13 }
 0x43b   :  { %1248 = vmatpush3.msra.mxu1 %v822_v22 }
 0x43c   :  { %1249 = vmatprep.subr.mxu1 %v821_v23 }
 0x43d   :  { %1250 = vmatpush3.msra.mxu1 %v821_v23 }
 0x43e   :  { %1251 = vmatprep.subr.mxu1 %v820_v24 }
 0x43f   :  { %1252 = vmatpush3.msra.mxu1 %v820_v24 }
 0x440   :  { %1253 = vmatprep.subr.mxu1 %v819_v25 }
 0x441   :  { %1254 = vmatpush3.msra.mxu1 %v819_v25 }
 0x442   :  { %1255 = vmatprep.subr.mxu1 %v818_v26 }
 0x443   :  { %1256 = vmatpush3.msra.mxu1 %v818_v26 }
 0x444   :  { %1257 = vmatprep.subr.mxu1 %v817_v27 }
 0x445   :  { %1258 = vmatpush3.msra.mxu1 %v817_v27 }
 0x446   :  { %1259 = vmatprep.subr.mxu1 %v816_v28 }
 0x447   :  { %1260 = vmatpush3.msra.mxu1 %v816_v28 }
 0x448   :  { %1261 = vmatprep.subr.mxu1 %v815_v29 }
 0x449   :  { %1262 = vmatpush3.msra.mxu1 %v815_v29 }
 0x4fa   :  { %v1234_v16 = vpop.f32.mrf.mxu1 }
 0x4fb   :  { %v678_v19 = vpack.c.bf16 %v1234_v16, %v1234_v16 }
 0x4fc   :  { %v668_v17 = vpop.f32.mrf.mxu1 }
 0x4fd   :  { %v677_v18 = vpack.c.bf16 %v668_v17, %v668_v17  ;;  %v723_v21 = vsel %vm219_vm2, %v678_v19, 0 }
 0x4ff   :  { %v680_v20 = vsel %vm219_vm2, %v677_v18, 0 }
 0x500   :  { %1236 = vmatpush3.bf16.msra.mxu0 %v680_v20 }
 0x501   :  { %1241 = vmatprep.subr.bf16.mxu0 %v1418_v7 }
 0x503   :  { %1238 = vmatmul.mubr.msk.bf16.vlgmr.msra.gmra.mxu0 %vm215_vm3, %v1542_v14 }
 0x504   :  { %1242 = vmatpush3.bf16.msra.mxu0 %v723_v21  ;;  %1243 = vmatprep.mubr.msk.bf16.mxu0 %vm1419_vm1, %v1418_v7 }
 0x505   :  { %1266 = vmatprep.subr.bf16.mxu0 %v1418_v7 }
 0x50b   :  { %1244 = vmatmul.mubr.msk.bf16.vlgmr.msra.gmra.mxu0 %vm215_vm3, %v1539_v11 }
 0x50c   :  { %1268 = vmatprep.mubr.msk.bf16.mxu0 %vm1419_vm1, %v1418_v7 }
 0x5c3   :  { %v716_v30 = vpop.f32.mrf.mxu0 }
 0x5c4   :  { %v775_v34 = vmul.f32 %v716_v30, %v716_v30  ;;  %v765_v36 = vsel %vm309_vm4, %v716_v30, 0.0 }
 0x5c5   :  { %v1239_v31 = vpop.f32.mrf.mxu0 }
 0x5c6   :  { %v777_v41 = vsel %vm309_vm4, %v775_v34, 0.0 }
 0x5c7   :  { %v719_v32 = vpop.f32.mrf.mxu0 }
 0x5c9   :  { %v1240_v33 = vpop.f32.mrf.mxu0 }
 0x5cb   :  { %v759_v35 = vpop.f32.mrf.mxu0 }
 0x5cc   :  { %v766_v37 = vsel %vm309_vm4, %v759_v35, 0.0  ;;  %v776_v38 = vmul.f32 %v759_v35, %v759_v35 }
 0x5cd   :  { %v767_v39 = vadd.f32 %v766_v37, %v765_v36  ;;  %v1245_v40 = vpop.f32.mrf.mxu0 }
 0x5ce   :  { %v778_v42 = vsel %vm309_vm4, %v776_v38, 0.0 }
 0x5cf   :  { %v768_v43 = vrot.slane %v767_v39, 4  ;;  %v779_v44 = vadd.f32 %v778_v42, %v777_v41  ;;  %v762_v45 = vpop.f32.mrf.mxu0 }
 0x5d1   :  { %v769_v46 = vadd.f32 %v768_v43, %v767_v39  ;;  %v780_v47 = vrot.slane %v779_v44, 4  ;;  %v1246_v48 = vpop.f32.mrf.mxu0 }
 0x5d3   :  { %v770_v49 = vrot.slane %v769_v46, 2  ;;  %v781_v50 = vadd.f32 %v780_v47, %v779_v44 }
 0x5d5   :  { %v771_v51 = vadd.f32 %v770_v49, %v769_v46  ;;  %v782_v52 = vrot.slane %v781_v50, 2 }
 0x5d7   :  { %v772_v53 = vrot.slane %v771_v51, 1  ;;  %v783_v54 = vadd.f32 %v782_v52, %v781_v50 }
 0x5d9   :  { %v773_v55 = vadd.f32 %v772_v53, %v771_v51  ;;  %v784_v56 = vrot.slane %v783_v54, 1 }
 0x5db   :  { %v774_v57 = vmul.f32 0.0625, %v773_v55  ;;  %v785_v58 = vadd.f32 %v784_v56, %v783_v54  ;;  %v1017_v55 = vld [vmem:[%s1661_s11] sm:$0x1] }
 0x5dd   :  { %v786_v59 = vmul.f32 0.0625, %v785_v58  ;;  %v787_v60 = vmul.f32 %v774_v57, %v774_v57  ;;  %v1021_v58 = vld [vmem:[%s1662_s12] sm:$0x1] }
 0x5df   :  { %v788_v62 = vsub.f32 %v786_v59, %v787_v60 }
 0x5e1   :  { %v789_v63 = vmax.f32 %v788_v62, 0.0 }
 0x5e3   :  { %v791_v0 = vadd.f32 1e-05, %v789_v63 }
 0x5e5   :  { %1292 = vrsqrt.f32 %v791_v0 }
 0x5f2   :  { %v1293_v2 = vpop.eup %1292 }
 0x5f3   :  { %v793_v3 = vmul.f32 %v1293_v2, %v790_v1 }
 0x5f5   :  { %v795_v5 = vmul.f32 %v793_v3, %v774_v57  ;;  %v801_v6 = vrot.slane %v793_v3, %v1559_v61 }
 0x5f7   :  { %v796_v8 = vsub.f32 %v794_v4, %v795_v5  ;;  %v803_v9 = vmul.f32 %v801_v6, %v716_v30  ;;  %v804_v10 = vmul.f32 %v801_v6, %v759_v35  ;;  %v1112_v4 = vld [vmem:[%s1663_s13] ss:$0 sm:$0xff] }
 0x5f9   :  { %v809_v12 = vrot.slane %v796_v8, %v1559_v61 }
 0x5fb   :  { %v812_v13 = vadd.f32 %v809_v12, %v804_v10  ;;  %v811_v15 = vadd.f32 %v809_v12, %v803_v9 }
 0x5fd   :  { %v814_v16 = vmax.f32 %v812_v13, 0.0  ;;  %v813_v17 = vmax.f32 %v811_v15, 0.0  ;;  %v1113_v15 = vld [vmem:[#allocation2] ss:$0 sm:$0xff] }
 0x5ff   :  { %1263 = vmatprep.mubr.msk.f32.mxu1 %vm309_vm4, %v813_v17 }
 0x600   :  { %1264 = vmatmul.mubr.msk.f32.vlgmr.msra.gmra.mxu1 %vm309_vm4, %v814_v16 }
 0x6c0   :  { %v1265_v18 = vpop.f32.mrf.mxu1 }
 0x6c1   :  { %v905_v21 = vpack.c.bf16 %v1265_v18, %v1265_v18 }
 0x6c2   :  { %v895_v19 = vpop.f32.mrf.mxu1 }
 0x6c3   :  { %v904_v20 = vpack.c.bf16 %v895_v19, %v895_v19  ;;  %v950_v23 = vsel %vm219_vm2, %v905_v21, 0 }
 0x6c5   :  { %v907_v22 = vsel %vm219_vm2, %v904_v20, 0 }
 0x6c6   :  { %1267 = vmatpush3.bf16.msra.mxu0 %v907_v22 }
 0x6c7   :  { %1272 = vmatprep.subr.bf16.mxu0 %v1418_v7 }
 0x6c9   :  { %1269 = vmatmul.mubr.msk.bf16.vlgmr.msra.gmra.mxu0 %vm215_vm3, %v1542_v14 }
 0x6ca   :  { %1273 = vmatpush3.bf16.msra.mxu0 %v950_v23  ;;  %1274 = vmatprep.mubr.msk.bf16.mxu0 %vm1419_vm1, %v1418_v7 }
 0x6d1   :  { %1275 = vmatmul.mubr.msk.bf16.vlgmr.msra.gmra.mxu0 %vm215_vm3, %v1539_v11 }
 0x789   :  { %v943_v24 = vpop.f32.mrf.mxu0 }
 0x78a   :  { %v1002_v28 = vmul.f32 %v943_v24, %v943_v24  ;;  %v992_v30 = vsel %vm309_vm4, %v943_v24, 0.0 }
 0x78b   :  { %v1270_v25 = vpop.f32.mrf.mxu0 }
 0x78c   :  { %v1004_v34 = vsel %vm309_vm4, %v1002_v28, 0.0 }
 0x78d   :  { %v946_v26 = vpop.f32.mrf.mxu0 }
 0x78f   :  { %v1271_v27 = vpop.f32.mrf.mxu0 }
 0x791   :  { %v986_v29 = vpop.f32.mrf.mxu0 }
 0x792   :  { %v993_v31 = vsel %vm309_vm4, %v986_v29, 0.0  ;;  %v1003_v32 = vmul.f32 %v986_v29, %v986_v29 }
 0x793   :  { %v994_v33 = vadd.f32 %v993_v31, %v992_v30  ;;  %v1276_v14 = vpop.f32.mrf.mxu0 }
 0x794   :  { %v1005_v7 = vsel %vm309_vm4, %v1003_v32, 0.0 }
 0x795   :  { %v995_v35 = vrot.slane %v994_v33, 4  ;;  %v1006_v36 = vadd.f32 %v1005_v7, %v1004_v34  ;;  %v989_v11 = vpop.f32.mrf.mxu0 }
 0x797   :  { %v996_v37 = vadd.f32 %v995_v35, %v994_v33  ;;  %v1007_v38 = vrot.slane %v1006_v36, 4  ;;  %v1277_v39 = vpop.f32.mrf.mxu0 }
 0x799   :  { %v997_v40 = vrot.slane %v996_v37, 2  ;;  %v1008_v41 = vadd.f32 %v1007_v38, %v1006_v36 }
 0x79b   :  { %v998_v42 = vadd.f32 %v997_v40, %v996_v37  ;;  %v1009_v43 = vrot.slane %v1008_v41, 2 }
 0x79d   :  { %v999_v44 = vrot.slane %v998_v42, 1  ;;  %v1010_v45 = vadd.f32 %v1009_v43, %v1008_v41 }
 0x79f   :  { %v1000_v46 = vadd.f32 %v999_v44, %v998_v42  ;;  %v1011_v47 = vrot.slane %v1010_v45, 1 }
 0x7a1   :  { %v1001_v48 = vmul.f32 0.0625, %v1000_v46  ;;  %v1012_v49 = vadd.f32 %v1011_v47, %v1010_v45 }
 0x7a3   :  { %v1013_v50 = vmul.f32 0.0625, %v1012_v49  ;;  %v1014_v51 = vmul.f32 %v1001_v48, %v1001_v48 }
 0x7a5   :  { %v1015_v52 = vsub.f32 %v1013_v50, %v1014_v51 }
 0x7a7   :  { %v1016_v53 = vmax.f32 %v1015_v52, 0.0 }
 0x7a9   :  { %v1018_v54 = vadd.f32 1e-05, %v1016_v53 }
 0x7ab   :  { %1294 = vrsqrt.f32 %v1018_v54 }
 0x7b8   :  { %v1295_v56 = vpop.eup %1294 }
 0x7b9   :  { %v1020_v57 = vmul.f32 %v1295_v56, %v1017_v55 }
 0x7bb   :  { %v1022_v59 = vmul.f32 %v1020_v57, %v1001_v48  ;;  %v1028_v60 = vrot.slane %v1020_v57, %v1559_v61 }
 0x7bd   :  { %v1023_v62 = vsub.f32 %v1021_v58, %v1022_v59  ;;  %v1031_v63 = vmul.f32 %v1028_v60, %v986_v29  ;;  %v1030_v0 = vmul.f32 %v1028_v60, %v943_v24 }
 0x7bf   :  { %v1036_v1 = vrot.slane %v1023_v62, %v1559_v61 }
 0x7c1   :  { %v1038_v2 = vadd.f32 %v1036_v1, %v1030_v0  ;;  %v1039_v3 = vadd.f32 %v1036_v1, %v1031_v63 }
 0x7c3   :  { %v1040_v5 = vmax.f32 %v1038_v2, 0.0  ;;  %v1041_v6 = vmax.f32 %v1039_v3, 0.0 }
 0x7c5   :  { %v1049_v8 = vmul.f32 %v1112_v4, %v1040_v5  ;;  %v1050_v9 = vmul.f32 %v1112_v4, %v1041_v6 }
 0x7c7   :  { %v1057_v10 = vsel %vm1056_vm5, %v1049_v8, 0.0  ;;  %v1053_v12 = vrot.slane %v1050_v9, 7 }
 0x7c8   :  { %1058 = vadd.xlane.f32.xlu1 %v1057_v10 }
 0x7c9   :  { %v1061_v13 = vsel %vm1060_vm6, %v1053_v12, 0.0 }
 0x7cc   :  { %1062 = vadd.xlane.f32.xlu1 %v1061_v13 }
 0x851   :  { %v1059_v16 = vpop.xlane.xlu1 %1058 }
 0x852   :  { %v1071_v61 = vadd.f32 %v1113_v15, %v1059_v16 }
 0x854   :  { %v1114_v17 = vmul.f32 -1.442695, %v1071_v61 }
 0x855   :  { %v1063_v18 = vpop.xlane.xlu1 %1062 }
 0x856   :  { %1296 = vpow2.f32 %v1114_v17  ;;  %v1072_v19 = vadd.f32 %v1113_v15, %v1063_v18 }
 0x858   :  { %v1115_v20 = vmul.f32 -1.442695, %v1072_v19 }
 0x85a   :  { %1298 = vpow2.f32 %v1115_v20 }
 0x863   :  { %v1297_v21 = vpop.eup %1296 }
 0x864   :  { %v1079_v22 = vadd.f32 1.0, %v1297_v21 }
 0x866   :  { %1300 = vrcp.f32 %v1079_v22 }
 0x867   :  { %v1299_v23 = vpop.eup %1298 }
 0x868   :  { %v1080_v24 = vadd.f32 1.0, %v1299_v23 }
 0x86a   :  { %1302 = vrcp.f32 %v1080_v24 }
 0x873   :  { %v1301_v25 = vpop.eup %1300 }
 0x874   :  { %1086 = vst.msk [vmem:[%s1665_s15 - $0x7] sm:$0x80] %vm1085_vm7, %v1301_v25 }
 0x877   :  { %v1303_v26 = vpop.eup %1302 }
 0x878   :  { %1088 = vst.msk [vmem:[%s1665_s15 + $0x1] sm:$0x1] %vm1087_vm8, %v1303_v26 }
 0x879   :  { %1093 = vsyncpa [#allocation4], 1 }
 0x87a   :  { %1094 = vsyncpa [#allocation6], 1 }
 0x87b   :  { %1095 = vsyncpa [#allocation9], 1 }

</bundles_post_ra>
